<compile_context>
chip_gen: v7x
topology: tpu7x:2x2x1
jax: 0.10.0
libtpu: 0.0.40
codegen_flags: <defaults>
</compile_context>

<pallas_src>
import functools

import jax
import jax.numpy as jnp
from jax.experimental import pallas as pl
from jax.experimental.pallas import tpu as pltpu

BN_EPS = 1e-5


# ---------------------------------------------------------------------------
# Fused kernel: entire tcn_regressor forward in one invocation.
# ---------------------------------------------------------------------------
def _tcn_fused_kernel(x_ref, w1_ref, w2_ref, wd_ref, w3_ref, w4_ref, p_ref,
                      out_ref, *, k, L, n):
    """Layout: channels on sublanes, time on lanes, batch concatenated along lanes."""
    nl = n * L

    # Fold the batch into the lane axis: (C_in, n*L).
    x = x_ref[0] if n == 1 else jnp.concatenate([x_ref[i] for i in range(n)], axis=1)

    # Within-sample time index of every lane (tiled copies -> no modulo needed).
    base = jax.lax.broadcasted_iota(jnp.int32, (1, L), 1)
    pos = base if n == 1 else jnp.concatenate([base] * n, axis=1)        # (1, n*L)

    def shift_causal(v, s):
        # u[:, t] = v[:, t - s] within the same sample; 0 where the causal window
        # runs past the sample start (per-sample boundary mask handles batch folding).
        if s == 0:
            return v
        shifted = jnp.concatenate(
            [jnp.zeros((v.shape[0], s), v.dtype), v[:, :nl - s]], axis=1)
        return jnp.where(pos >= s, shifted, 0.0)

    def causal_conv(v, w_flat, d):
        # w_flat: (C_out, k*C) with tap-major columns (column block j <-> shift (k-1-j)*d).
        c = v.shape[0]
        taps = [shift_causal(v, (k - 1 - j) * d) for j in range(k)]
        if c % 8 == 0:
            # Sublane-aligned: stack taps into the contraction dim -> single matmul.
            stacked = jnp.concatenate(taps, axis=0)                      # (k*C, n*L)
            return jnp.dot(w_flat, stacked, preferred_element_type=jnp.float32)
        # Unaligned channel count (first conv, C_in=4): k tiny matmuls instead of a
        # sublane-unaligned stack; MXU work is free filler at this size anyway.
        acc = None
        for j in range(k):
            part = jnp.dot(w_flat[:, j * c:(j + 1) * c], taps[j],
                           preferred_element_type=jnp.float32)
            acc = part if acc is None else acc + part
        return acc

    def bn_relu(y, g, b):
        # Training-mode BatchNorm1d: biased variance over the (N, L) axes = all
        # n*L lanes per channel row; two-pass (subtract-mean) for numerical safety.
        mean = jnp.mean(y, axis=1, keepdims=True)
        var = jnp.mean(jnp.square(y - mean), axis=1, keepdims=True)
        scale = g * jax.lax.rsqrt(var + BN_EPS)
        shift = b - mean * scale
        return jnp.maximum(y * scale + shift, 0.0)

    g1, b1 = p_ref[:, 0:1], p_ref[:, 1:2]
    g2, b2 = p_ref[:, 2:3], p_ref[:, 3:4]
    g3, b3 = p_ref[:, 4:5], p_ref[:, 5:6]
    g4, b4 = p_ref[:, 6:7], p_ref[:, 7:8]
    bd0 = p_ref[:, 8:9]

    # ---- temporal block 1 (dilation 1), 1x1-conv residual ----
    z1 = bn_relu(causal_conv(x, w1_ref[...], 1), g1, b1)
    z2 = bn_relu(causal_conv(z1, w2_ref[...], 1), g2, b2)
    res0 = jnp.dot(wd_ref[...], x, preferred_element_type=jnp.float32) + bd0
    out0 = jnp.maximum(z2 + res0, 0.0)

    # ---- temporal block 2 (dilation 2), identity residual (downsample1 is None) ----
    z3 = bn_relu(causal_conv(out0, w3_ref[...], 2), g3, b3)
    z4 = bn_relu(causal_conv(z3, w4_ref[...], 2), g4, b4)
    out1 = jnp.maximum(z4 + out0, 0.0)

    # ---- emit only the last timestep of each sample, directly in (n, C_out) layout:
    # one-hot selection matmul contracting over lanes -> no in-kernel transpose needed.
    lane = jax.lax.broadcasted_iota(jnp.int32, (n, nl), 1)
    row = jax.lax.broadcasted_iota(jnp.int32, (n, nl), 0)
    sel = (lane == (row + 1) * L - 1).astype(jnp.float32)
    out_nc = jax.lax.dot_general(sel, out1, (((1,), (1,)), ((), ())),
                                 preferred_element_type=jnp.float32)
    out_ref[...] = out_nc.astype(out_ref.dtype)


# ---------------------------------------------------------------------------
# Wrapper: one pallas_call, no host-side math.
# ---------------------------------------------------------------------------
def tcn_regressor_forward(x, params, *, k):
    """x: (N, C_in, L) float32. Returns (N, tcn_layers[1]). One kernel launch."""
    n, c_in, L = x.shape
    c_out = params["w1"].shape[0]
    kern = functools.partial(_tcn_fused_kernel, k=k, L=L, n=n)
    # NOTE(v7x): grid=(1,) runs on one TensorCore; at this latency-bound size that is
    # the right trade. If N/L grow, split the lane axis over a "parallel" grid dim
    # (per-core partial BN sums) to use both v7x cores.
    return pl.pallas_call(
        kern,
        out_shape=jax.ShapeDtypeStruct((n, c_out), jnp.float32),
        grid=(1,),
        in_specs=[
            pl.BlockSpec((n, c_in, L), lambda i: (0, 0, 0)),
            pl.BlockSpec((c_out, k * c_in), lambda i: (0, 0)),
            pl.BlockSpec((c_out, k * c_out), lambda i: (0, 0)),
            pl.BlockSpec((c_out, c_in), lambda i: (0, 0)),
            pl.BlockSpec((c_out, k * c_out), lambda i: (0, 0)),
            pl.BlockSpec((c_out, k * c_out), lambda i: (0, 0)),
            pl.BlockSpec((c_out, 9), lambda i: (0, 0)),
        ],
        out_specs=pl.BlockSpec((n, c_out), lambda i: (0, 0)),
        compiler_params=pltpu.CompilerParams(
            dimension_semantics=("arbitrary",)),
    )(x, params["w1"], params["w2"], params["wd0"],
      params["w3"], params["w4"], params["bnp"])


# ---------------------------------------------------------------------------
# Pure-JAX reference of the same forward pass
# ---------------------------------------------------------------------------
def _reference_forward(x, W1, g1, b1, W2, g2, b2, Wd0, bd0, W3, g3, b3, W4, g4, b4):
    def causal_conv(xx, w, d):
        kk = w.shape[-1]
        pad = (kk - 1) * d
        xp = jnp.pad(xx, ((0, 0), (0, 0), (pad, 0)))
        L = xx.shape[2]
        y = jnp.zeros((xx.shape[0], w.shape[0], L), jnp.float32)
        for j in range(kk):
            y = y + jnp.einsum("oc,ncl->nol", w[:, :, j], xp[:, :, j * d:j * d + L])
        return y

    def bn_relu(y, g, b):
        mean = jnp.mean(y, axis=(0, 2), keepdims=True)
        var = jnp.mean((y - mean) ** 2, axis=(0, 2), keepdims=True)
        yn = (y - mean) * jax.lax.rsqrt(var + BN_EPS)
        return jnp.maximum(yn * g[None, :, None] + b[None, :, None], 0.0)

    z1 = bn_relu(causal_conv(x, W1, 1), g1, b1)
    z2 = bn_relu(causal_conv(z1, W2, 1), g2, b2)
    res0 = jnp.einsum("oc,ncl->nol", Wd0, x) + bd0[None, :, None]
    out0 = jnp.maximum(z2 + res0, 0.0)

    z3 = bn_relu(causal_conv(out0, W3, 2), g3, b3)
    z4 = bn_relu(causal_conv(z3, W4, 2), g4, b4)
    out1 = jnp.maximum(z4 + out0, 0.0)              # downsample1 is None (8 == 8)
    return out1[:, :, -1]


# ---------------------------------------------------------------------------
if __name__ == "__main__":
    key = jax.random.PRNGKey(0)
    ks = jax.random.split(key, 16)

    # configs: input_channels=4, tcn_layers=[8, 8], tcn_kernel_size=3
    N, L = 2, 128
    c_in, hidden, k = 4, 8, 3

    def uni(kk, shape, fan_in):
        bound = 1.0 / (fan_in ** 0.5)
        return jax.random.uniform(kk, shape, minval=-bound, maxval=bound,
                                  dtype=jnp.float32)

    x = jax.random.normal(ks[0], (N, c_in, L), dtype=jnp.float32)

    # conv_block1 / conv_block2 weights (PyTorch layout (C_out, C_in, k), bias=False)
    W1 = uni(ks[1], (hidden, c_in, k), c_in * k)
    W2 = uni(ks[2], (hidden, hidden, k), hidden * k)
    W3 = uni(ks[3], (hidden, hidden, k), hidden * k)
    W4 = uni(ks[4], (hidden, hidden, k), hidden * k)
    # downsample0: Conv1d(c_in, hidden, 1) with bias (c_in != hidden)
    Wd0 = uni(ks[5], (hidden, c_in), c_in)
    bd0 = uni(ks[6], (hidden,), c_in)
    # BatchNorm1d learnable params (training-mode batch stats used in forward)
    g1 = 1.0 + 0.1 * jax.random.normal(ks[7], (hidden,), dtype=jnp.float32)
    b1 = 0.1 * jax.random.normal(ks[8], (hidden,), dtype=jnp.float32)
    g2 = 1.0 + 0.1 * jax.random.normal(ks[9], (hidden,), dtype=jnp.float32)
    b2 = 0.1 * jax.random.normal(ks[10], (hidden,), dtype=jnp.float32)
    g3 = 1.0 + 0.1 * jax.random.normal(ks[11], (hidden,), dtype=jnp.float32)
    b3 = 0.1 * jax.random.normal(ks[12], (hidden,), dtype=jnp.float32)
    g4 = 1.0 + 0.1 * jax.random.normal(ks[13], (hidden,), dtype=jnp.float32)
    b4 = 0.1 * jax.random.normal(ks[14], (hidden,), dtype=jnp.float32)

    def flat_w(w):
        # PyTorch (C_out, C_in, k) -> (C_out, k*C_in), tap-major columns so column
        # block j matches the kernel's tap-j (shift (k-1-j)*d) stacking order.
        co, ci, kk = w.shape
        return jnp.transpose(w, (0, 2, 1)).reshape(co, kk * ci)

    params = dict(
        w1=flat_w(W1), w2=flat_w(W2), w3=flat_w(W3), w4=flat_w(W4),
        wd0=Wd0,
        # per-channel BN gammas/betas + downsample bias packed into one (C_out, 9) operand
        bnp=jnp.stack([g1, b1, g2, b2, g3, b3, g4, b4, bd0], axis=1),
    )

    out = tcn_regressor_forward(x, params, k=k)
    out = jax.block_until_ready(out)

    ref = _reference_forward(x, W1, g1, b1, W2, g2, b2, Wd0, bd0,
                             W3, g3, b3, W4, g4, b4)

    assert out.shape == (N, hidden)
    assert jnp.allclose(out, ref, atol=2e-3, rtol=2e-3), (
        float(jnp.max(jnp.abs(out - ref))))

    print("KERNEL_OK")
</pallas_src>

<mosaic_0001>
module attributes {stable_mosaic.version = 11 : i64} {
  func.func @_tcn_fused_kernel(%arg0: i32, %arg1: memref<2x4x128xf32, #tpu.memory_space<vmem>>, %arg2: memref<8x12xf32, #tpu.memory_space<vmem>>, %arg3: memref<8x24xf32, #tpu.memory_space<vmem>>, %arg4: memref<8x4xf32, #tpu.memory_space<vmem>>, %arg5: memref<8x24xf32, #tpu.memory_space<vmem>>, %arg6: memref<8x24xf32, #tpu.memory_space<vmem>>, %arg7: memref<8x9xf32, #tpu.memory_space<vmem>>, %arg8: memref<2x8xf32, #tpu.memory_space<vmem>>) attributes {dimension_semantics = [#tpu.dimension_semantics<arbitrary>], iteration_bounds = array<i64: 1>, scalar_prefetch = 0 : i64, scratch_operands = 0 : i64, tpu.core_type = #tpu.core_type<tc>, window_params = [{pipeline_mode = #tpu.pipeline_mode<synchronous>, transform_indices = @transform_0, window_bounds = array<i64: 2, 4, 128>}, {pipeline_mode = #tpu.pipeline_mode<synchronous>, transform_indices = @transform_1, window_bounds = array<i64: 8, 12>}, {pipeline_mode = #tpu.pipeline_mode<synchronous>, transform_indices = @transform_2, window_bounds = array<i64: 8, 24>}, {pipeline_mode = #tpu.pipeline_mode<synchronous>, transform_indices = @transform_3, window_bounds = array<i64: 8, 4>}, {pipeline_mode = #tpu.pipeline_mode<synchronous>, transform_indices = @transform_4, window_bounds = array<i64: 8, 24>}, {pipeline_mode = #tpu.pipeline_mode<synchronous>, transform_indices = @transform_5, window_bounds = array<i64: 8, 24>}, {pipeline_mode = #tpu.pipeline_mode<synchronous>, transform_indices = @transform_6, window_bounds = array<i64: 8, 9>}, {pipeline_mode = #tpu.pipeline_mode<synchronous>, transform_indices = @transform_7, window_bounds = array<i64: 2, 8>}]} {
    %c0 = arith.constant 0 : index
    %c0_0 = arith.constant 0 : index
    %c0_1 = arith.constant 0 : index
    %0 = vector.load %arg1[%c0, %c0_0, %c0_1] : memref<2x4x128xf32, #tpu.memory_space<vmem>>, vector<1x4x128xf32>
    %1 = vector.shape_cast %0 : vector<1x4x128xf32> to vector<4x128xf32>
    %c1 = arith.constant 1 : index
    %c0_2 = arith.constant 0 : index
    %c0_3 = arith.constant 0 : index
    %2 = vector.load %arg1[%c1, %c0_2, %c0_3] : memref<2x4x128xf32, #tpu.memory_space<vmem>>, vector<1x4x128xf32>
    %3 = vector.shape_cast %2 : vector<1x4x128xf32> to vector<4x128xf32>
    %4 = tpu.concatenate %1, %3 in 1 : vector<4x128xf32>, vector<4x128xf32> -> vector<4x256xf32>
    %5 = tpu.iota {dimensions = array<i32: 1>} : vector<1x128xi32>
    %6 = tpu.concatenate %5, %5 in 1 : vector<1x128xi32>, vector<1x128xi32> -> vector<1x256xi32>
    %c0_4 = arith.constant 0 : index
    %c0_5 = arith.constant 0 : index
    %7 = vector.load %arg7[%c0_4, %c0_5] : memref<8x9xf32, #tpu.memory_space<vmem>>, vector<8x1xf32>
    %c0_6 = arith.constant 0 : index
    %c1_7 = arith.constant 1 : index
    %8 = vector.load %arg7[%c0_6, %c1_7] : memref<8x9xf32, #tpu.memory_space<vmem>>, vector<8x1xf32>
    %c0_8 = arith.constant 0 : index
    %c2 = arith.constant 2 : index
    %9 = vector.load %arg7[%c0_8, %c2] : memref<8x9xf32, #tpu.memory_space<vmem>>, vector<8x1xf32>
    %c0_9 = arith.constant 0 : index
    %c3 = arith.constant 3 : index
    %10 = vector.load %arg7[%c0_9, %c3] : memref<8x9xf32, #tpu.memory_space<vmem>>, vector<8x1xf32>
    %c0_10 = arith.constant 0 : index
    %c4 = arith.constant 4 : index
    %11 = vector.load %arg7[%c0_10, %c4] : memref<8x9xf32, #tpu.memory_space<vmem>>, vector<8x1xf32>
    %c0_11 = arith.constant 0 : index
    %c5 = arith.constant 5 : index
    %12 = vector.load %arg7[%c0_11, %c5] : memref<8x9xf32, #tpu.memory_space<vmem>>, vector<8x1xf32>
    %c0_12 = arith.constant 0 : index
    %c6 = arith.constant 6 : index
    %13 = vector.load %arg7[%c0_12, %c6] : memref<8x9xf32, #tpu.memory_space<vmem>>, vector<8x1xf32>
    %c0_13 = arith.constant 0 : index
    %c7 = arith.constant 7 : index
    %14 = vector.load %arg7[%c0_13, %c7] : memref<8x9xf32, #tpu.memory_space<vmem>>, vector<8x1xf32>
    %c0_14 = arith.constant 0 : index
    %c8 = arith.constant 8 : index
    %15 = vector.load %arg7[%c0_14, %c8] : memref<8x9xf32, #tpu.memory_space<vmem>>, vector<8x1xf32>
    %c0_15 = arith.constant 0 : index
    %c0_16 = arith.constant 0 : index
    %16 = vector.load %arg2[%c0_15, %c0_16] : memref<8x12xf32, #tpu.memory_space<vmem>>, vector<8x12xf32>
    %cst = arith.constant 0.000000e+00 : f32
    %17 = vector.broadcast %cst : f32 to vector<4x2xf32>
    %18 = vector.extract_strided_slice %4 {offsets = [0, 0], sizes = [4, 254], strides = [1, 1]} : vector<4x256xf32> to vector<4x254xf32>
    %19 = tpu.concatenate %17, %18 in 1 : vector<4x2xf32>, vector<4x254xf32> -> vector<4x256xf32>
    %c2_i32 = arith.constant 2 : i32
    %20 = vector.broadcast %c2_i32 : i32 to vector<1x256xi32>
    %21 = arith.cmpi sge, %6, %20 : vector<1x256xi32>
    %cst_17 = arith.constant 0.000000e+00 : f32
    %22 = vector.shape_cast %21 : vector<1x256xi1> to vector<1x256xi1>
    %23 = vector.broadcast %22 : vector<1x256xi1> to vector<4x256xi1>
    %24 = vector.broadcast %cst_17 : f32 to vector<4x256xf32>
    %25 = arith.select %23, %19, %24 : vector<4x256xi1>, vector<4x256xf32>
    %cst_18 = arith.constant 0.000000e+00 : f32
    %26 = vector.broadcast %cst_18 : f32 to vector<4x1xf32>
    %27 = vector.extract_strided_slice %4 {offsets = [0, 0], sizes = [4, 255], strides = [1, 1]} : vector<4x256xf32> to vector<4x255xf32>
    %28 = tpu.concatenate %26, %27 in 1 : vector<4x1xf32>, vector<4x255xf32> -> vector<4x256xf32>
    %c1_i32 = arith.constant 1 : i32
    %29 = vector.broadcast %c1_i32 : i32 to vector<1x256xi32>
    %30 = arith.cmpi sge, %6, %29 : vector<1x256xi32>
    %cst_19 = arith.constant 0.000000e+00 : f32
    %31 = vector.shape_cast %30 : vector<1x256xi1> to vector<1x256xi1>
    %32 = vector.broadcast %31 : vector<1x256xi1> to vector<4x256xi1>
    %33 = vector.broadcast %cst_19 : f32 to vector<4x256xf32>
    %34 = arith.select %32, %28, %33 : vector<4x256xi1>, vector<4x256xf32>
    %35 = vector.extract_strided_slice %16 {offsets = [0, 0], sizes = [8, 4], strides = [1, 1]} : vector<8x12xf32> to vector<8x4xf32>
    %cst_20 = arith.constant dense<0.000000e+00> : vector<8x256xf32>
    %36 = tpu.matmul %35, %25, %cst_20 {dimension_numbers = #tpu.dot_dimension_numbers<[1], [0], [0], [1], [0, 0, 1, 1], [], []>} : vector<8x4xf32>, vector<4x256xf32>, vector<8x256xf32> -> vector<8x256xf32>
    %37 = vector.extract_strided_slice %16 {offsets = [0, 4], sizes = [8, 4], strides = [1, 1]} : vector<8x12xf32> to vector<8x4xf32>
    %cst_21 = arith.constant dense<0.000000e+00> : vector<8x256xf32>
    %38 = tpu.matmul %37, %34, %cst_21 {dimension_numbers = #tpu.dot_dimension_numbers<[1], [0], [0], [1], [0, 0, 1, 1], [], []>} : vector<8x4xf32>, vector<4x256xf32>, vector<8x256xf32> -> vector<8x256xf32>
    %39 = arith.addf %36, %38 : vector<8x256xf32>
    %40 = vector.extract_strided_slice %16 {offsets = [0, 8], sizes = [8, 4], strides = [1, 1]} : vector<8x12xf32> to vector<8x4xf32>
    %cst_22 = arith.constant dense<0.000000e+00> : vector<8x256xf32>
    %41 = tpu.matmul %40, %4, %cst_22 {dimension_numbers = #tpu.dot_dimension_numbers<[1], [0], [0], [1], [0, 0, 1, 1], [], []>} : vector<8x4xf32>, vector<4x256xf32>, vector<8x256xf32> -> vector<8x256xf32>
    %42 = arith.addf %39, %41 : vector<8x256xf32>
    %cst_23 = arith.constant dense<0.000000e+00> : vector<8xf32>
    %43 = vector.multi_reduction <add>, %42, %cst_23 [1] : vector<8x256xf32> to vector<8xf32>
    %44 = vector.shape_cast %43 : vector<8xf32> to vector<8x1xf32>
    %cst_24 = arith.constant 2.560000e+02 : f32
    %45 = vector.broadcast %cst_24 : f32 to vector<8x1xf32>
    %46 = arith.divf %44, %45 : vector<8x1xf32>
    %47 = vector.broadcast %46 : vector<8x1xf32> to vector<8x256xf32>
    %48 = arith.subf %42, %47 : vector<8x256xf32>
    %49 = arith.mulf %48, %48 : vector<8x256xf32>
    %cst_25 = arith.constant dense<0.000000e+00> : vector<8xf32>
    %50 = vector.multi_reduction <add>, %49, %cst_25 [1] : vector<8x256xf32> to vector<8xf32>
    %51 = vector.shape_cast %50 : vector<8xf32> to vector<8x1xf32>
    %cst_26 = arith.constant 2.560000e+02 : f32
    %52 = vector.broadcast %cst_26 : f32 to vector<8x1xf32>
    %53 = arith.divf %51, %52 : vector<8x1xf32>
    %cst_27 = arith.constant 9.99999974E-6 : f32
    %54 = vector.broadcast %cst_27 : f32 to vector<8x1xf32>
    %55 = arith.addf %53, %54 : vector<8x1xf32>
    %56 = math.rsqrt %55 : vector<8x1xf32>
    %57 = arith.mulf %7, %56 : vector<8x1xf32>
    %58 = arith.mulf %46, %57 : vector<8x1xf32>
    %59 = arith.subf %8, %58 : vector<8x1xf32>
    %60 = vector.broadcast %57 : vector<8x1xf32> to vector<8x256xf32>
    %61 = arith.mulf %42, %60 : vector<8x256xf32>
    %62 = vector.broadcast %59 : vector<8x1xf32> to vector<8x256xf32>
    %63 = arith.addf %61, %62 : vector<8x256xf32>
    %cst_28 = arith.constant 0.000000e+00 : f32
    %64 = vector.broadcast %cst_28 : f32 to vector<8x256xf32>
    %65 = arith.maximumf %63, %64 : vector<8x256xf32>
    %c0_29 = arith.constant 0 : index
    %c0_30 = arith.constant 0 : index
    %66 = vector.load %arg3[%c0_29, %c0_30] : memref<8x24xf32, #tpu.memory_space<vmem>>, vector<8x24xf32>
    %cst_31 = arith.constant 0.000000e+00 : f32
    %67 = vector.broadcast %cst_31 : f32 to vector<8x2xf32>
    %68 = vector.extract_strided_slice %65 {offsets = [0, 0], sizes = [8, 254], strides = [1, 1]} : vector<8x256xf32> to vector<8x254xf32>
    %69 = tpu.concatenate %67, %68 in 1 : vector<8x2xf32>, vector<8x254xf32> -> vector<8x256xf32>
    %c2_i32_32 = arith.constant 2 : i32
    %70 = vector.broadcast %c2_i32_32 : i32 to vector<1x256xi32>
    %71 = arith.cmpi sge, %6, %70 : vector<1x256xi32>
    %cst_33 = arith.constant 0.000000e+00 : f32
    %72 = vector.shape_cast %71 : vector<1x256xi1> to vector<1x256xi1>
    %73 = vector.broadcast %72 : vector<1x256xi1> to vector<8x256xi1>
    %74 = vector.broadcast %cst_33 : f32 to vector<8x256xf32>
    %75 = arith.select %73, %69, %74 : vector<8x256xi1>, vector<8x256xf32>
    %cst_34 = arith.constant 0.000000e+00 : f32
    %76 = vector.broadcast %cst_34 : f32 to vector<8x1xf32>
    %77 = vector.extract_strided_slice %65 {offsets = [0, 0], sizes = [8, 255], strides = [1, 1]} : vector<8x256xf32> to vector<8x255xf32>
    %78 = tpu.concatenate %76, %77 in 1 : vector<8x1xf32>, vector<8x255xf32> -> vector<8x256xf32>
    %c1_i32_35 = arith.constant 1 : i32
    %79 = vector.broadcast %c1_i32_35 : i32 to vector<1x256xi32>
    %80 = arith.cmpi sge, %6, %79 : vector<1x256xi32>
    %cst_36 = arith.constant 0.000000e+00 : f32
    %81 = vector.shape_cast %80 : vector<1x256xi1> to vector<1x256xi1>
    %82 = vector.broadcast %81 : vector<1x256xi1> to vector<8x256xi1>
    %83 = vector.broadcast %cst_36 : f32 to vector<8x256xf32>
    %84 = arith.select %82, %78, %83 : vector<8x256xi1>, vector<8x256xf32>
    %85 = tpu.concatenate %75, %84, %65 in 0 : vector<8x256xf32>, vector<8x256xf32>, vector<8x256xf32> -> vector<24x256xf32>
    %cst_37 = arith.constant dense<0.000000e+00> : vector<8x256xf32>
    %86 = tpu.matmul %66, %85, %cst_37 {dimension_numbers = #tpu.dot_dimension_numbers<[1], [0], [0], [1], [0, 0, 1, 1], [], []>} : vector<8x24xf32>, vector<24x256xf32>, vector<8x256xf32> -> vector<8x256xf32>
    %cst_38 = arith.constant dense<0.000000e+00> : vector<8xf32>
    %87 = vector.multi_reduction <add>, %86, %cst_38 [1] : vector<8x256xf32> to vector<8xf32>
    %88 = vector.shape_cast %87 : vector<8xf32> to vector<8x1xf32>
    %cst_39 = arith.constant 2.560000e+02 : f32
    %89 = vector.broadcast %cst_39 : f32 to vector<8x1xf32>
    %90 = arith.divf %88, %89 : vector<8x1xf32>
    %91 = vector.broadcast %90 : vector<8x1xf32> to vector<8x256xf32>
    %92 = arith.subf %86, %91 : vector<8x256xf32>
    %93 = arith.mulf %92, %92 : vector<8x256xf32>
    %cst_40 = arith.constant dense<0.000000e+00> : vector<8xf32>
    %94 = vector.multi_reduction <add>, %93, %cst_40 [1] : vector<8x256xf32> to vector<8xf32>
    %95 = vector.shape_cast %94 : vector<8xf32> to vector<8x1xf32>
    %cst_41 = arith.constant 2.560000e+02 : f32
    %96 = vector.broadcast %cst_41 : f32 to vector<8x1xf32>
    %97 = arith.divf %95, %96 : vector<8x1xf32>
    %cst_42 = arith.constant 9.99999974E-6 : f32
    %98 = vector.broadcast %cst_42 : f32 to vector<8x1xf32>
    %99 = arith.addf %97, %98 : vector<8x1xf32>
    %100 = math.rsqrt %99 : vector<8x1xf32>
    %101 = arith.mulf %9, %100 : vector<8x1xf32>
    %102 = arith.mulf %90, %101 : vector<8x1xf32>
    %103 = arith.subf %10, %102 : vector<8x1xf32>
    %104 = vector.broadcast %101 : vector<8x1xf32> to vector<8x256xf32>
    %105 = arith.mulf %86, %104 : vector<8x256xf32>
    %106 = vector.broadcast %103 : vector<8x1xf32> to vector<8x256xf32>
    %107 = arith.addf %105, %106 : vector<8x256xf32>
    %cst_43 = arith.constant 0.000000e+00 : f32
    %108 = vector.broadcast %cst_43 : f32 to vector<8x256xf32>
    %109 = arith.maximumf %107, %108 : vector<8x256xf32>
    %c0_44 = arith.constant 0 : index
    %c0_45 = arith.constant 0 : index
    %110 = vector.load %arg4[%c0_44, %c0_45] : memref<8x4xf32, #tpu.memory_space<vmem>>, vector<8x4xf32>
    %cst_46 = arith.constant dense<0.000000e+00> : vector<8x256xf32>
    %111 = tpu.matmul %110, %4, %cst_46 {dimension_numbers = #tpu.dot_dimension_numbers<[1], [0], [0], [1], [0, 0, 1, 1], [], []>} : vector<8x4xf32>, vector<4x256xf32>, vector<8x256xf32> -> vector<8x256xf32>
    %112 = vector.broadcast %15 : vector<8x1xf32> to vector<8x256xf32>
    %113 = arith.addf %111, %112 : vector<8x256xf32>
    %114 = arith.addf %109, %113 : vector<8x256xf32>
    %cst_47 = arith.constant 0.000000e+00 : f32
    %115 = vector.broadcast %cst_47 : f32 to vector<8x256xf32>
    %116 = arith.maximumf %114, %115 : vector<8x256xf32>
    %c0_48 = arith.constant 0 : index
    %c0_49 = arith.constant 0 : index
    %117 = vector.load %arg5[%c0_48, %c0_49] : memref<8x24xf32, #tpu.memory_space<vmem>>, vector<8x24xf32>
    %cst_50 = arith.constant 0.000000e+00 : f32
    %118 = vector.broadcast %cst_50 : f32 to vector<8x4xf32>
    %119 = vector.extract_strided_slice %116 {offsets = [0, 0], sizes = [8, 252], strides = [1, 1]} : vector<8x256xf32> to vector<8x252xf32>
    %120 = tpu.concatenate %118, %119 in 1 : vector<8x4xf32>, vector<8x252xf32> -> vector<8x256xf32>
    %c4_i32 = arith.constant 4 : i32
    %121 = vector.broadcast %c4_i32 : i32 to vector<1x256xi32>
    %122 = arith.cmpi sge, %6, %121 : vector<1x256xi32>
    %cst_51 = arith.constant 0.000000e+00 : f32
    %123 = vector.shape_cast %122 : vector<1x256xi1> to vector<1x256xi1>
    %124 = vector.broadcast %123 : vector<1x256xi1> to vector<8x256xi1>
    %125 = vector.broadcast %cst_51 : f32 to vector<8x256xf32>
    %126 = arith.select %124, %120, %125 : vector<8x256xi1>, vector<8x256xf32>
    %cst_52 = arith.constant 0.000000e+00 : f32
    %127 = vector.broadcast %cst_52 : f32 to vector<8x2xf32>
    %128 = vector.extract_strided_slice %116 {offsets = [0, 0], sizes = [8, 254], strides = [1, 1]} : vector<8x256xf32> to vector<8x254xf32>
    %129 = tpu.concatenate %127, %128 in 1 : vector<8x2xf32>, vector<8x254xf32> -> vector<8x256xf32>
    %c2_i32_53 = arith.constant 2 : i32
    %130 = vector.broadcast %c2_i32_53 : i32 to vector<1x256xi32>
    %131 = arith.cmpi sge, %6, %130 : vector<1x256xi32>
    %cst_54 = arith.constant 0.000000e+00 : f32
    %132 = vector.shape_cast %131 : vector<1x256xi1> to vector<1x256xi1>
    %133 = vector.broadcast %132 : vector<1x256xi1> to vector<8x256xi1>
    %134 = vector.broadcast %cst_54 : f32 to vector<8x256xf32>
    %135 = arith.select %133, %129, %134 : vector<8x256xi1>, vector<8x256xf32>
    %136 = tpu.concatenate %126, %135, %116 in 0 : vector<8x256xf32>, vector<8x256xf32>, vector<8x256xf32> -> vector<24x256xf32>
    %cst_55 = arith.constant dense<0.000000e+00> : vector<8x256xf32>
    %137 = tpu.matmul %117, %136, %cst_55 {dimension_numbers = #tpu.dot_dimension_numbers<[1], [0], [0], [1], [0, 0, 1, 1], [], []>} : vector<8x24xf32>, vector<24x256xf32>, vector<8x256xf32> -> vector<8x256xf32>
    %cst_56 = arith.constant dense<0.000000e+00> : vector<8xf32>
    %138 = vector.multi_reduction <add>, %137, %cst_56 [1] : vector<8x256xf32> to vector<8xf32>
    %139 = vector.shape_cast %138 : vector<8xf32> to vector<8x1xf32>
    %cst_57 = arith.constant 2.560000e+02 : f32
    %140 = vector.broadcast %cst_57 : f32 to vector<8x1xf32>
    %141 = arith.divf %139, %140 : vector<8x1xf32>
    %142 = vector.broadcast %141 : vector<8x1xf32> to vector<8x256xf32>
    %143 = arith.subf %137, %142 : vector<8x256xf32>
    %144 = arith.mulf %143, %143 : vector<8x256xf32>
    %cst_58 = arith.constant dense<0.000000e+00> : vector<8xf32>
    %145 = vector.multi_reduction <add>, %144, %cst_58 [1] : vector<8x256xf32> to vector<8xf32>
    %146 = vector.shape_cast %145 : vector<8xf32> to vector<8x1xf32>
    %cst_59 = arith.constant 2.560000e+02 : f32
    %147 = vector.broadcast %cst_59 : f32 to vector<8x1xf32>
    %148 = arith.divf %146, %147 : vector<8x1xf32>
    %cst_60 = arith.constant 9.99999974E-6 : f32
    %149 = vector.broadcast %cst_60 : f32 to vector<8x1xf32>
    %150 = arith.addf %148, %149 : vector<8x1xf32>
    %151 = math.rsqrt %150 : vector<8x1xf32>
    %152 = arith.mulf %11, %151 : vector<8x1xf32>
    %153 = arith.mulf %141, %152 : vector<8x1xf32>
    %154 = arith.subf %12, %153 : vector<8x1xf32>
    %155 = vector.broadcast %152 : vector<8x1xf32> to vector<8x256xf32>
    %156 = arith.mulf %137, %155 : vector<8x256xf32>
    %157 = vector.broadcast %154 : vector<8x1xf32> to vector<8x256xf32>
    %158 = arith.addf %156, %157 : vector<8x256xf32>
    %cst_61 = arith.constant 0.000000e+00 : f32
    %159 = vector.broadcast %cst_61 : f32 to vector<8x256xf32>
    %160 = arith.maximumf %158, %159 : vector<8x256xf32>
    %c0_62 = arith.constant 0 : index
    %c0_63 = arith.constant 0 : index
    %161 = vector.load %arg6[%c0_62, %c0_63] : memref<8x24xf32, #tpu.memory_space<vmem>>, vector<8x24xf32>
    %cst_64 = arith.constant 0.000000e+00 : f32
    %162 = vector.broadcast %cst_64 : f32 to vector<8x4xf32>
    %163 = vector.extract_strided_slice %160 {offsets = [0, 0], sizes = [8, 252], strides = [1, 1]} : vector<8x256xf32> to vector<8x252xf32>
    %164 = tpu.concatenate %162, %163 in 1 : vector<8x4xf32>, vector<8x252xf32> -> vector<8x256xf32>
    %c4_i32_65 = arith.constant 4 : i32
    %165 = vector.broadcast %c4_i32_65 : i32 to vector<1x256xi32>
    %166 = arith.cmpi sge, %6, %165 : vector<1x256xi32>
    %cst_66 = arith.constant 0.000000e+00 : f32
    %167 = vector.shape_cast %166 : vector<1x256xi1> to vector<1x256xi1>
    %168 = vector.broadcast %167 : vector<1x256xi1> to vector<8x256xi1>
    %169 = vector.broadcast %cst_66 : f32 to vector<8x256xf32>
    %170 = arith.select %168, %164, %169 : vector<8x256xi1>, vector<8x256xf32>
    %cst_67 = arith.constant 0.000000e+00 : f32
    %171 = vector.broadcast %cst_67 : f32 to vector<8x2xf32>
    %172 = vector.extract_strided_slice %160 {offsets = [0, 0], sizes = [8, 254], strides = [1, 1]} : vector<8x256xf32> to vector<8x254xf32>
    %173 = tpu.concatenate %171, %172 in 1 : vector<8x2xf32>, vector<8x254xf32> -> vector<8x256xf32>
    %c2_i32_68 = arith.constant 2 : i32
    %174 = vector.broadcast %c2_i32_68 : i32 to vector<1x256xi32>
    %175 = arith.cmpi sge, %6, %174 : vector<1x256xi32>
    %cst_69 = arith.constant 0.000000e+00 : f32
    %176 = vector.shape_cast %175 : vector<1x256xi1> to vector<1x256xi1>
    %177 = vector.broadcast %176 : vector<1x256xi1> to vector<8x256xi1>
    %178 = vector.broadcast %cst_69 : f32 to vector<8x256xf32>
    %179 = arith.select %177, %173, %178 : vector<8x256xi1>, vector<8x256xf32>
    %180 = tpu.concatenate %170, %179, %160 in 0 : vector<8x256xf32>, vector<8x256xf32>, vector<8x256xf32> -> vector<24x256xf32>
    %cst_70 = arith.constant dense<0.000000e+00> : vector<8x256xf32>
    %181 = tpu.matmul %161, %180, %cst_70 {dimension_numbers = #tpu.dot_dimension_numbers<[1], [0], [0], [1], [0, 0, 1, 1], [], []>} : vector<8x24xf32>, vector<24x256xf32>, vector<8x256xf32> -> vector<8x256xf32>
    %cst_71 = arith.constant dense<0.000000e+00> : vector<8xf32>
    %182 = vector.multi_reduction <add>, %181, %cst_71 [1] : vector<8x256xf32> to vector<8xf32>
    %183 = vector.shape_cast %182 : vector<8xf32> to vector<8x1xf32>
    %cst_72 = arith.constant 2.560000e+02 : f32
    %184 = vector.broadcast %cst_72 : f32 to vector<8x1xf32>
    %185 = arith.divf %183, %184 : vector<8x1xf32>
    %186 = vector.broadcast %185 : vector<8x1xf32> to vector<8x256xf32>
    %187 = arith.subf %181, %186 : vector<8x256xf32>
    %188 = arith.mulf %187, %187 : vector<8x256xf32>
    %cst_73 = arith.constant dense<0.000000e+00> : vector<8xf32>
    %189 = vector.multi_reduction <add>, %188, %cst_73 [1] : vector<8x256xf32> to vector<8xf32>
    %190 = vector.shape_cast %189 : vector<8xf32> to vector<8x1xf32>
    %cst_74 = arith.constant 2.560000e+02 : f32
    %191 = vector.broadcast %cst_74 : f32 to vector<8x1xf32>
    %192 = arith.divf %190, %191 : vector<8x1xf32>
    %cst_75 = arith.constant 9.99999974E-6 : f32
    %193 = vector.broadcast %cst_75 : f32 to vector<8x1xf32>
    %194 = arith.addf %192, %193 : vector<8x1xf32>
    %195 = math.rsqrt %194 : vector<8x1xf32>
    %196 = arith.mulf %13, %195 : vector<8x1xf32>
    %197 = arith.mulf %185, %196 : vector<8x1xf32>
    %198 = arith.subf %14, %197 : vector<8x1xf32>
    %199 = vector.broadcast %196 : vector<8x1xf32> to vector<8x256xf32>
    %200 = arith.mulf %181, %199 : vector<8x256xf32>
    %201 = vector.broadcast %198 : vector<8x1xf32> to vector<8x256xf32>
    %202 = arith.addf %200, %201 : vector<8x256xf32>
    %cst_76 = arith.constant 0.000000e+00 : f32
    %203 = vector.broadcast %cst_76 : f32 to vector<8x256xf32>
    %204 = arith.maximumf %202, %203 : vector<8x256xf32>
    %205 = arith.addf %204, %116 : vector<8x256xf32>
    %cst_77 = arith.constant 0.000000e+00 : f32
    %206 = vector.broadcast %cst_77 : f32 to vector<8x256xf32>
    %207 = arith.maximumf %205, %206 : vector<8x256xf32>
    %208 = tpu.iota {dimensions = array<i32: 1>} : vector<2x256xi32>
    %209 = tpu.iota {dimensions = array<i32: 0>} : vector<2x256xi32>
    %c1_i32_78 = arith.constant 1 : i32
    %210 = vector.broadcast %c1_i32_78 : i32 to vector<2x256xi32>
    %211 = arith.addi %209, %210 : vector<2x256xi32>
    %c128_i32 = arith.constant 128 : i32
    %212 = vector.broadcast %c128_i32 : i32 to vector<2x256xi32>
    %213 = arith.muli %211, %212 : vector<2x256xi32>
    %c1_i32_79 = arith.constant 1 : i32
    %214 = vector.broadcast %c1_i32_79 : i32 to vector<2x256xi32>
    %215 = arith.subi %213, %214 : vector<2x256xi32>
    %216 = arith.cmpi eq, %208, %215 : vector<2x256xi32>
    %217 = arith.extui %216 : vector<2x256xi1> to vector<2x256xi32>
    %218 = arith.sitofp %217 : vector<2x256xi32> to vector<2x256xf32>
    %cst_80 = arith.constant dense<0.000000e+00> : vector<2x8xf32>
    %219 = tpu.matmul %218, %207, %cst_80 {dimension_numbers = #tpu.dot_dimension_numbers<[1], [1], [0], [0], [0, 0, 1, 0], [], []>} : vector<2x256xf32>, vector<8x256xf32>, vector<2x8xf32> -> vector<2x8xf32>
    %c0_81 = arith.constant 0 : index
    %c0_82 = arith.constant 0 : index
    %220 = vector.load %arg8[%c0_81, %c0_82] : memref<2x8xf32, #tpu.memory_space<vmem>>, vector<2x8xf32>
    tpu.vector_store %arg8[%c0_81, %c0_82], %219 {strides = array<i32>} : memref<2x8xf32, #tpu.memory_space<vmem>>, vector<2x8xf32>,
    return
  }
  func.func @transform_0(%arg0: i32) -> (i32, i32, i32) {
    %c0_i32 = arith.constant 0 : i32
    %c0_i32_0 = arith.constant 0 : i32
    %c0_i32_1 = arith.constant 0 : i32
    %c0_i32_2 = arith.constant 0 : i32
    return %c0_i32, %c0_i32_0, %c0_i32_1 : i32, i32, i32
  }
  func.func @transform_1(%arg0: i32) -> (i32, i32) {
    %c0_i32 = arith.constant 0 : i32
    %c0_i32_0 = arith.constant 0 : i32
    %c0_i32_1 = arith.constant 0 : i32
    return %c0_i32, %c0_i32_0 : i32, i32
  }
  func.func @transform_2(%arg0: i32) -> (i32, i32) {
    %c0_i32 = arith.constant 0 : i32
    %c0_i32_0 = arith.constant 0 : i32
    %c0_i32_1 = arith.constant 0 : i32
    return %c0_i32, %c0_i32_0 : i32, i32
  }
  func.func @transform_3(%arg0: i32) -> (i32, i32) {
    %c0_i32 = arith.constant 0 : i32
    %c0_i32_0 = arith.constant 0 : i32
    %c0_i32_1 = arith.constant 0 : i32
    return %c0_i32, %c0_i32_0 : i32, i32
  }
  func.func @transform_4(%arg0: i32) -> (i32, i32) {
    %c0_i32 = arith.constant 0 : i32
    %c0_i32_0 = arith.constant 0 : i32
    %c0_i32_1 = arith.constant 0 : i32
    return %c0_i32, %c0_i32_0 : i32, i32
  }
  func.func @transform_5(%arg0: i32) -> (i32, i32) {
    %c0_i32 = arith.constant 0 : i32
    %c0_i32_0 = arith.constant 0 : i32
    %c0_i32_1 = arith.constant 0 : i32
    return %c0_i32, %c0_i32_0 : i32, i32
  }
  func.func @transform_6(%arg0: i32) -> (i32, i32) {
    %c0_i32 = arith.constant 0 : i32
    %c0_i32_0 = arith.constant 0 : i32
    %c0_i32_1 = arith.constant 0 : i32
    return %c0_i32, %c0_i32_0 : i32, i32
  }
  func.func @transform_7(%arg0: i32) -> (i32, i32) {
    %c0_i32 = arith.constant 0 : i32
    %c0_i32_0 = arith.constant 0 : i32
    %c0_i32_1 = arith.constant 0 : i32
    return %c0_i32, %c0_i32_0 : i32, i32
  }
}

</mosaic_0001>

<bundles_post_ra>
// kernel: tpu_custom_call.1
= control target key start
LH: loop header
LB: loop body
LE: loop exit
PB: predicated region body
PF: predicated region fallthrough
CT: control target
= control target key end

     0   :  { %12 = vsyncpa [#allocation3], 0  ;;  %s1421_s0 = inlined_call_operand.vmem [shape: f32[2,4,128], index: 0, kind: input, shape index: {}]   ;;  %s1422_s1 = inlined_call_operand.hbm [shape: f32[8,12], index: 1, kind: input, shape index: {}]   ;;  %s1423_s2 = inlined_call_operand.vmem [shape: f32[8,24], index: 2, kind: input, shape index: {}]   ;;  %s1424_s3 = inlined_call_operand.vmem [shape: f32[8,4], index: 3, kind: input, shape index: {}]   ;;  %s1425_s4 = inlined_call_operand.vmem [shape: f32[8,24], index: 4, kind: input, shape index: {}]   ;;  %s1426_s5 = inlined_call_operand.hbm [shape: f32[8,24], index: 5, kind: input, shape index: {}]   ;;  %s1427_s6 = inlined_call_operand.vmem [shape: f32[8,9], index: 6, kind: input, shape index: {}]   ;;  %s1428_s7 = inlined_call_operand.hbm [shape: f32[2,8], index: 7, kind: output, shape index: {}]  }
   0x1   :  { %13 = vsyncpa [#allocation6], 0 }
   0x2   :  { %14 = vsyncpa [#allocation4], 0  ;;  %s1169_s24 = smov [#allocation2]   ;;  %s1170_s26 = smov [#allocation5]  }
   0x3   :  { %s23_s25 = sshll.u32 %s1169_s24, 4  ;;  %s39_s27 = sshll.u32 %s1170_s26, 4  ;;  %s24_s25 = int_to_ptr.vmem [resolvable:$true] %s23_s25  ;;  %s40_s27 = int_to_ptr.vmem [resolvable:$true] %s39_s27 }
   0x4   :  { %s1097_s30 = scalar_lea.hbm %s1422_s1, 128 }
   0x5   :  { %p1098_p0 = scmp.ne.s32.totalorder %s1422_s1, %s1097_s30  ;;  %p1101_p1 = scmp.lt.u32.totalorder %s1097_s30, %s1422_s1 }
   0x7   :  { %p1103_p2 = pnand %p1101_p1, %p1098_p0 }
   0x9   :  { %1106 = shalt.err (!%p1103_p2)
}
   0xa   :  { %s1107_s12 = scalar_lea.vmem %s24_s25, 128  ;;  %p1112_p4 = scmp.lt.s32.totalorder %s24_s25, %s24_s25 }
   0xb   :  { %p1108_p3 = scmp.ne.s32.totalorder %s24_s25, %s1107_s12  ;;  %p1113_p5 = scmp.lt.s32.totalorder %s1107_s12, %s1107_s12 }
   0xd   :  { %p1114_p6 = por %p1113_p5, %p1112_p4 }
   0xf   :  { %p1115_p7 = pnand %p1114_p6, %p1108_p3 }
  0x11   :  { %1118 = shalt.err (!%p1115_p7)
}
  0x12   :  { %26 = dma.hbm_to_vmem [thread:$0]  %s1422_s1, 128, %s24_s25, [#allocation3]  }
  0x13   :  { %s1119_s17 = scalar_lea.hbm %s1426_s5, 128 }
  0x14   :  { %p1120_p8 = scmp.ne.s32.totalorder %s1426_s5, %s1119_s17  ;;  %p1123_p9 = scmp.lt.u32.totalorder %s1119_s17, %s1426_s5 }
  0x16   :  { %p1125_p10 = pnand %p1123_p9, %p1120_p8 }
  0x18   :  { %1128 = shalt.err (!%p1125_p10)
}
  0x19   :  { %s1129_s22 = scalar_lea.vmem %s40_s27, 128  ;;  %p1134_p12 = scmp.lt.s32.totalorder %s40_s27, %s40_s27 }
  0x1a   :  { %p1130_p11 = scmp.ne.s32.totalorder %s40_s27, %s1129_s22  ;;  %p1135_p13 = scmp.lt.s32.totalorder %s1129_s22, %s1129_s22 }
  0x1c   :  { %p1136_p0 = por %p1135_p13, %p1134_p12 }
  0x1e   :  { %p1137_p1 = pnand %p1136_p0, %p1130_p11 }
  0x20   :  { %1140 = shalt.err (!%p1137_p1)
}
  0x21   :  { %42 = dma.hbm_to_vmem [thread:$0]  %s1426_s5, 128, %s40_s27, [#allocation6]  }
  0x22   :  { %1163 = dma.done.wait [#allocation3], 128  }
  0x23   :  { %1164 = vsyncadd [#allocation3], 4294967168 }
  0x24   :  { %1165 = dma.done.wait [#allocation6], 128  }
  0x25   :  { %1166 = vsyncadd [#allocation6], 4294967168  ;;  %v1171_v0 = vmov 0.0   ;;  %v1172_v1 = vmov 0   ;;  %v1258_v2 = vld [vmem:[%s1421_s0] sm:$0xf]  ;;  %v54_v5 = vlaneseq }
  0x26   :  { %252 = vmatprep.mubr.f32.mxu0 %v1171_v0  ;;  %173 = vmatprep.mubr.f32.mxu1 %v1171_v0  ;;  %s1173_s26 = smov 2   ;;  %s1174_s5 = smov 1   ;;  %v1267_v3 = vld [vmem:[%s1421_s0 + $0x4] sm:$0xf]  ;;  %vm82_vm2 = vcmask 7168   ;;  %vm64_vm3 = vcmask 15360  }
  0x27   :  { %1050 = vset.pattern.permute.xlu1 %v1172_v1  ;;  %60 = vrot.lane.b32.xlu0 %v1258_v2, %s1173_s26  ;;  %v57_v4 = vld [vmem:[#allocation2] sm:$0xff]  ;;  %s1175_s29 = smov 124   ;;  %s1176_s30 = smov 120   ;;  %v1273_v6 = vand.u32 127, %v54_v5  ;;  %v1275_v7 = vshrl.u32 %v54_v5, 7  ;;  %vm102_vm6 = vcmask 1043456  }
  0x28   :  { %78 = vrot.lane.b32.xlu1 %v1258_v2, %s1174_s5  ;;  %vm99_vm7 = vcmask 31744   ;;  %v1177_v46 = vmov 1   ;;  %v1323_v47 = vld [vmem:[%s1427_s6] sm:$0xff]  ;;  %vm401_vm9 = vcmask 195584   ;;  %vm958_vm15 = vcmask 58368  }
  0x29   :  { %vm87_vm0 = vcmp.ge.s32.totalorder %v1273_v6, 1  ;;  %vm69_vm1 = vcmp.ge.s32.totalorder %v1273_v6, 2  ;;  %v1281_v9 = vsub.s32 0, %v1275_v7  ;;  %1051 = vset.pattern.permute.xlu0 %v1177_v46  ;;  %vm608_vm10 = vcmp.ge.s32.totalorder %v1273_v6, 4 }
  0x2a   :  { %v88_v8 = vsel %vm87_vm0, 1, %v1172_v1  ;;  %v70_v10 = vsel %vm69_vm1, 1, %v1172_v1 }
  0x2b   :  { %62 = vrot.lane.b32.xlu0 %v1267_v3, %s1173_s26  ;;  %v92_v11 = vrot.slane %v88_v8, %v1281_v9  ;;  %v74_v14 = vrot.slane %v70_v10, %v1281_v9 }
  0x2c   :  { %80 = vrot.lane.b32.xlu1 %v1267_v3, %s1174_s5 }
  0x2d   :  { %vm1287_vm4 = vcmp.eq.s32.totalorder %v92_v11, 1  ;;  %vm1292_vm5 = vcmp.eq.s32.totalorder %v74_v14, 1 }
  0x2e   :  { %vm1010_vm8 = vmpackc.low %vm1287_vm4, %vm1292_vm5 }
  0x2f   :  { %97 = vrot.lane.b32.xlu0 %v57_v4, %s1175_s29 }
  0x30   :  { %259 = vrot.lane.b32.xlu1 %v57_v4, %s1176_s30 }
  0x99   :  { %v61_v12 = vpop.permute.xlu0 %60 }
  0x9a   :  { %v79_v13 = vpop.permute.xlu1 %78  ;;  %v68_v17 = vsel %vm64_vm3, 0.0, %v61_v12 }
  0x9b   :  { %v86_v15 = vsel %vm82_vm2, 0.0, %v79_v13  ;;  %v76_v26 = vsel %vm1292_vm5, %v68_v17, 0.0 }
  0x9c   :  { %v94_v23 = vsel %vm1287_vm4, %v86_v15, 0.0 }
  0x9d   :  { %v63_v18 = vpop.permute.xlu0 %62 }
  0x9e   :  { %v81_v19 = vpop.permute.xlu1 %80  ;;  %v65_v21 = vsel %vm64_vm3, %v61_v12, %v63_v18  ;;  %v378_v18 = vld [vmem:[%s1423_s2] sm:$0xff] }
  0x9f   :  { %v83_v22 = vsel %vm82_vm2, %v79_v13, %v81_v19  ;;  %v77_v24 = vsel %vm1292_vm5, %v65_v21, 0.0 }
  0xa0   :  { %v95_v25 = vsel %vm1287_vm4, %v83_v22, 0.0  ;;  %980 = vmatprep.subr.msk.mxu0 %vm102_vm6, %v77_v24 }
  0xa1   :  { %977 = vmatprep.subr.msk.mxu1 %vm102_vm6, %v95_v25  ;;  %981 = vmatpush1.msk.msra.mxu0 %vm102_vm6, %v76_v26  ;;  %v98_v27 = vpop.permute.xlu0 %97 }
  0xa2   :  { %978 = vmatpush1.msk.msra.mxu1 %vm102_vm6, %v94_v23  ;;  %982 = vmatmul.mubr.msk.f32.vlgmr.msra.gmra.mrb[0].mxu0 %vm99_vm7, %v57_v4  ;;  %v260_v28 = vpop.permute.xlu1 %259 }
  0xa3   :  { %983 = vmatprep.subr.msk.mxu0 %vm102_vm6, %v1267_v3  ;;  %979 = vmatmul.mubr.msk.f32.vlgmr.msra.gmra.mrb[0].mxu1 %vm99_vm7, %v98_v27 }
  0xa4   :  { %984 = vmatpush1.msk.msra.mxu0 %vm102_vm6, %v1258_v2  ;;  %331 = vmatprep.mubr.f32.mxu0 %v1171_v0 }
  0xa5   :  { %469 = vmatprep.mubr.f32.mxu1 %v1171_v0 }
  0xaa   :  { %985 = vmatmul.mubr.msk.f32.vlgmr.msra.gmra.mrb[0].mxu0 %vm99_vm7, %v260_v28 }
  0xab   :  { %694 = vmatprep.mubr.f32.mxu0 %v1171_v0 }
 0x176   :  { %v175_v29 = vpop.f32.mrb[0].mxu1 }
 0x177   :  { %v177_v30 = vpop.f32.mrb[1].mxu1 }
 0x17d   :  { %v333_v31 = vpop.f32.mrb[0].mxu0 }
 0x17e   :  { %v1027_v32 = vadd.f32 %v333_v31, %v175_v29  ;;  %v335_v33 = vpop.f32.mrb[1].mxu0  ;;  %v1178_v29 = vmov 2  }
 0x17f   :  { %v1028_v34 = vadd.f32 %v335_v33, %v177_v30 }
 0x181   :  { %v340_v35 = vadd.f32 %v1028_v34, %v1027_v32 }
 0x183   :  { %341 = vadd.xlane.f32.xlu0 %v340_v35 }
 0x210   :  { %v342_v36 = vpop.xlane.xlu0 %341 }
 0x211   :  { %v344_v37 = vmul.f32 0.00390625, %v342_v36  ;;  %v1180_v36 = vmov 8  }
 0x213   :  { %v345_v38 = vsub.f32 %v1027_v32, %v344_v37  ;;  %v346_v39 = vsub.f32 %v1028_v34, %v344_v37 }
 0x215   :  { %v347_v40 = vmul.f32 %v345_v38, %v345_v38  ;;  %v348_v41 = vmul.f32 %v346_v39, %v346_v39 }
 0x217   :  { %v349_v42 = vadd.f32 %v348_v41, %v347_v40 }
 0x219   :  { %350 = vadd.xlane.f32.xlu1 %v349_v42 }
 0x2a6   :  { %v351_v43 = vpop.xlane.xlu1 %350 }
 0x2a7   :  { %v352_v44 = vmul.f32 0.00390625, %v351_v43 }
 0x2a9   :  { %v353_v45 = vadd.f32 1e-05, %v352_v44 }
 0x2ab   :  { %1089 = vrsqrt.f32 %v353_v45 }
 0x2b5   :  { %v1090_v48 = vpop.eup %1089 }
 0x2b6   :  { %v355_v49 = vmul.f32 %v1090_v48, %v1323_v47 }
 0x2b8   :  { %364 = vperm.xlu1 %1050, %v355_v49   ;;  %v356_v50 = vmul.f32 %v355_v49, %v344_v37 }
 0x2ba   :  { %358 = vrot.lane.b32.xlu0 %v356_v50, %s1174_s5 }
 0x2bc   :  { %1062 = vset.pattern.permute.xlu1 %v1178_v29 }
 0x32c   :  { %v359_v51 = vpop.permute.xlu0 %358 }
 0x32d   :  { %v361_v52 = vsub.f32 %v1323_v47, %v359_v51 }
 0x32f   :  { %371 = vperm.xlu0 %1051, %v361_v52  }
 0x337   :  { %v365_v53 = vpop.permute.xlu1 %364 }
 0x338   :  { %v367_v54 = vmul.f32 %v1027_v32, %v365_v53  ;;  %v368_v55 = vmul.f32 %v1028_v34, %v365_v53  ;;  %v1179_v32 = vmov 3  }
 0x339   :  { %1063 = vset.pattern.permute.xlu0 %v1179_v32 }
 0x3ae   :  { %v372_v56 = vpop.permute.xlu0 %371 }
 0x3af   :  { %v374_v57 = vadd.f32 %v372_v56, %v367_v54  ;;  %v375_v58 = vadd.f32 %v372_v56, %v368_v55 }
 0x3b1   :  { %v376_v59 = vmax.f32 %v374_v57, 0.0  ;;  %v377_v60 = vmax.f32 %v375_v58, 0.0  ;;  %v609_v57 = vsel %vm608_vm10, 1, %v1172_v1 }
 0x3b2   :  { %v613_v58 = vrot.slane %v609_v57, %v1281_v9 }
 0x3b3   :  { %v1052_v61 = vpack.i.bf16 %v377_v60, %v376_v59 }
 0x3b4   :  { %vm614_vm11 = vcmp.eq.s32.totalorder %v613_v58, 1 }
 0x3b5   :  { %1053 = vrot.lane.b32.xlu1 %v1052_v61, %s1173_s26  ;;  %vm1373_vm12 = vmpackc.low %vm1292_vm5, %vm614_vm11 }
 0x3b9   :  { %1058 = vrot.lane.b32.xlu1 %v1052_v61, %s1174_s5 }
 0x427   :  { %v1054_v62 = vpop.permute.xlu1 %1053 }
 0x428   :  { %v1056_v63 = vunpack.i.h.bf16 %v1054_v62  ;;  %v1055_v4 = vunpack.i.l.bf16 %v1054_v62 }
 0x42a   :  { %v385_v11 = vsel %vm64_vm3, %v1055_v4, %v1056_v63  ;;  %v388_v12 = vsel %vm64_vm3, 0.0, %v1055_v4 }
 0x42b   :  { %v1059_v5 = vpop.permute.xlu1 %1058 }
 0x42c   :  { %v1061_v8 = vunpack.i.h.bf16 %v1059_v5  ;;  %v1060_v10 = vunpack.i.l.bf16 %v1059_v5 }
 0x42e   :  { %v395_v13 = vsel %vm82_vm2, %v1060_v10, %v1061_v8  ;;  %v398_v14 = vsel %vm82_vm2, 0.0, %v1060_v10 }
 0x42f   :  { %v1009_v15 = vpack.c.bf16 %v395_v13, %v385_v11  ;;  %v1012_v17 = vpack.c.bf16 %v398_v14, %v388_v12  ;;  %v597_v13 = vld [vmem:[%s1425_s4] sm:$0xff]  ;;  %s1187_s4 = smov [#allocation7]  }
 0x430   :  { %s966_s13 = sshll.u32 %s1187_s4, 4  ;;  %s967_s13 = int_to_ptr.vmem [resolvable:$true] %s966_s13 }
 0x431   :  { %1011 = vmatprep.subr.msk.bf16.mxu1 %vm1010_vm8, %v1009_v15  ;;  %s1141_s14 = scalar_lea.vmem %s967_s13, 32  ;;  %p1146_p3 = scmp.lt.s32.totalorder %s967_s13, %s967_s13 }
 0x432   :  { %1014 = vmatpush1.bf16.msk.msra.mxu1 %vm1010_vm8, %v1012_v17  ;;  %p1142_p2 = scmp.ne.s32.totalorder %s967_s13, %s1141_s14  ;;  %p1147_p4 = scmp.lt.s32.totalorder %s1141_s14, %s1141_s14 }
 0x433   :  { %409 = vmatprep.subr.mxu1 %v377_v60 }
 0x434   :  { %p1148_p5 = por %p1147_p4, %p1146_p3 }
 0x436   :  { %410 = vmatpush1.msra.mxu1 %v376_v59  ;;  %p1149_p6 = pnand %p1148_p5, %p1142_p2 }
 0x437   :  { %990 = vmatmul.mubr.msk.f32.vlgmr.msra.gmra.mrb[2].mxu1 %vm401_vm9, %v378_v18  ;;  %991 = vmatprep.subr.msk.mxu1 %vm102_vm6, %v1267_v3 }
 0x438   :  { %992 = vmatpush1.msk.msra.mxu1 %vm102_vm6, %v1258_v2  ;;  %586 = vmatprep.mubr.f32.mxu1 %v1171_v0  ;;  %v513_v2 = vld [vmem:[%s1424_s3] sm:$0xff]  ;;  %s1181_s3 = smov 4  }
 0x43b   :  { %993 = vmatmul.mubr.msk.f32.vlgmr.msra.gmra.mrb[4].mxu1 %vm99_vm7, %v513_v2 }
 0x43c   :  { %828 = vmatprep.mubr.f32.mxu1 %v1171_v0 }
 0x50a   :  { %v471_v16 = vpop.f32.mrb[2].mxu1 }
 0x50b   :  { %v473_v19 = vpop.f32.mrb[3].mxu1 }
 0x50c   :  { %v476_v21 = vadd.f32 %v473_v19, %v471_v16 }
 0x50e   :  { %477 = vadd.xlane.f32.xlu0 %v476_v21  ;;  %v588_v37 = vpop.f32.mrb[4].mxu1 }
 0x50f   :  { %v590_v39 = vpop.f32.mrb[5].mxu1 }
 0x59b   :  { %v478_v22 = vpop.xlane.xlu0 %477 }
 0x59c   :  { %v479_v23 = vmul.f32 0.00390625, %v478_v22 }
 0x59e   :  { %v480_v24 = vsub.f32 %v471_v16, %v479_v23  ;;  %v481_v25 = vsub.f32 %v473_v19, %v479_v23 }
 0x5a0   :  { %v482_v26 = vmul.f32 %v480_v24, %v480_v24  ;;  %v483_v27 = vmul.f32 %v481_v25, %v481_v25  ;;  %v1182_v24 = vmov 4  }
 0x5a2   :  { %v484_v28 = vadd.f32 %v483_v27, %v482_v26 }
 0x5a4   :  { %485 = vadd.xlane.f32.xlu1 %v484_v28 }
 0x631   :  { %v486_v3 = vpop.xlane.xlu1 %485 }
 0x632   :  { %v487_v30 = vmul.f32 0.00390625, %v486_v3  ;;  %v1183_v3 = vmov 5  }
 0x634   :  { %v488_v31 = vadd.f32 1e-05, %v487_v30 }
 0x636   :  { %1091 = vrsqrt.f32 %v488_v31 }
 0x640   :  { %v1092_v33 = vpop.eup %1091 }
 0x641   :  { %v490_v34 = vmul.f32 %v1092_v33, %v1323_v47 }
 0x643   :  { %499 = vperm.xlu1 %1062, %v490_v34   ;;  %v491_v35 = vmul.f32 %v490_v34, %v479_v23 }
 0x645   :  { %493 = vrot.lane.b32.xlu0 %v491_v35, %s1174_s5 }
 0x647   :  { %1064 = vset.pattern.permute.xlu1 %v1180_v36 }
 0x648   :  { %516 = vperm.xlu1 %1064, %v1323_v47  }
 0x64c   :  { %1075 = vset.pattern.permute.xlu1 %v1182_v24 }
 0x6b7   :  { %v494_v38 = vpop.permute.xlu0 %493 }
 0x6b8   :  { %v496_v0 = vsub.f32 %v1323_v47, %v494_v38 }
 0x6ba   :  { %506 = vperm.xlu0 %1063, %v496_v0  }
 0x6c2   :  { %v500_v40 = vpop.permute.xlu1 %499 }
 0x6c3   :  { %v502_v42 = vmul.f32 %v500_v40, %v471_v16  ;;  %v503_v43 = vmul.f32 %v500_v40, %v473_v19 }
 0x6c7   :  { %v517_v41 = vpop.permute.xlu1 %516 }
 0x6c8   :  { %v589_v48 = vadd.f32 %v588_v37, %v517_v41  ;;  %v591_v49 = vadd.f32 %v590_v39, %v517_v41 }
 0x739   :  { %v507_v44 = vpop.permute.xlu0 %506 }
 0x73a   :  { %v509_v45 = vadd.f32 %v507_v44, %v502_v42  ;;  %v510_v46 = vadd.f32 %v507_v44, %v503_v43 }
 0x73c   :  { %v511_v50 = vmax.f32 %v509_v45, 0.0  ;;  %v512_v51 = vmax.f32 %v510_v46, 0.0 }
 0x73e   :  { %v593_v52 = vadd.f32 %v589_v48, %v511_v50  ;;  %v594_v53 = vadd.f32 %v591_v49, %v512_v51 }
 0x740   :  { %v1356_v54 = vmax.f32 %v593_v52, 0.0  ;;  %v1358_v55 = vmax.f32 %v594_v53, 0.0  ;;  %v738_v53 = vld [vmem:[#allocation5] sm:$0xff] }
 0x742   :  { %v1070_v56 = vpack.i.bf16 %v1358_v55, %v1356_v54 }
 0x744   :  { %1071 = vrot.lane.b32.xlu0 %v1070_v56, %s1173_s26  ;;  %1066 = vrot.lane.b32.xlu1 %v1070_v56, %s1181_s3 }
 0x7b6   :  { %v1072_v59 = vpop.permute.xlu0 %1071  ;;  %v1067_v60 = vpop.permute.xlu1 %1066 }
 0x7b7   :  { %v1074_v61 = vunpack.i.h.bf16 %v1072_v59  ;;  %v1073_v62 = vunpack.i.l.bf16 %v1072_v59  ;;  %v1069_v63 = vunpack.i.h.bf16 %v1067_v60  ;;  %v1068_v4 = vunpack.i.l.bf16 %v1067_v60 }
 0x7b9   :  { %v621_v5 = vsel %vm64_vm3, %v1073_v62, %v1074_v61  ;;  %v624_v8 = vsel %vm64_vm3, 0.0, %v1073_v62  ;;  %v604_v10 = vsel %vm99_vm7, %v1068_v4, %v1069_v63  ;;  %v607_v11 = vsel %vm99_vm7, 0.0, %v1068_v4 }
 0x7ba   :  { %v1015_v9 = vpack.c.bf16 %v621_v5, %v604_v10  ;;  %v1018_v12 = vpack.c.bf16 %v624_v8, %v607_v11  ;;  %v1184_v8 = vmov 6  }
 0x7bc   :  { %1017 = vmatprep.subr.msk.bf16.mxu0 %vm1373_vm12, %v1015_v9  ;;  %v1185_v9 = vmov 7  }
 0x7bd   :  { %1020 = vmatpush1.bf16.msk.msra.mxu0 %vm1373_vm12, %v1018_v12  ;;  %1088 = vset.pattern.permute.xlu0 %v1185_v9 }
 0x7be   :  { %634 = vmatprep.subr.mxu0 %v1358_v55 }
 0x7c1   :  { %635 = vmatpush1.msra.mxu0 %v1356_v54 }
 0x7c2   :  { %998 = vmatmul.mubr.msk.f32.vlgmr.msra.gmra.mrb[2].mxu0 %vm401_vm9, %v597_v13 }
 0x895   :  { %v696_v20 = vpop.f32.mrb[2].mxu0 }
 0x896   :  { %v698_v14 = vpop.f32.mrb[3].mxu0 }
 0x897   :  { %v701_v15 = vadd.f32 %v698_v14, %v696_v20 }
 0x899   :  { %702 = vadd.xlane.f32.xlu1 %v701_v15 }
 0x926   :  { %v703_v17 = vpop.xlane.xlu1 %702 }
 0x927   :  { %v704_v18 = vmul.f32 0.00390625, %v703_v17  ;;  %v879_v17 = vadd.s32 1, %v1275_v7 }
 0x929   :  { %v705_v16 = vsub.f32 %v696_v20, %v704_v18  ;;  %v706_v19 = vsub.f32 %v698_v14, %v704_v18 }
 0x92b   :  { %v707_v21 = vmul.f32 %v705_v16, %v705_v16  ;;  %v708_v22 = vmul.f32 %v706_v19, %v706_v19  ;;  %v876_v16 = vadd.s32 128, %v1273_v6 }
 0x92d   :  { %v709_v23 = vadd.f32 %v708_v22, %v707_v21  ;;  %v1186_v21 = vmov 1.0  }
 0x92f   :  { %710 = vadd.xlane.f32.xlu0 %v709_v23 }
 0x9bc   :  { %v711_v25 = vpop.xlane.xlu0 %710 }
 0x9bd   :  { %v712_v26 = vmul.f32 0.00390625, %v711_v25 }
 0x9bf   :  { %v713_v27 = vadd.f32 1e-05, %v712_v26 }
 0x9c1   :  { %1093 = vrsqrt.f32 %v713_v27 }
 0x9cb   :  { %v1094_v28 = vpop.eup %1093 }
 0x9cc   :  { %v715_v29 = vmul.f32 %v1094_v28, %v1323_v47 }
 0x9ce   :  { %724 = vperm.xlu1 %1075, %v715_v29   ;;  %v716_v2 = vmul.f32 %v715_v29, %v704_v18  ;;  %v880_v18 = vmul.u32 128, %v879_v17 }
 0x9d0   :  { %718 = vrot.lane.b32.xlu0 %v716_v2, %s1174_s5  ;;  %v1004_v19 = vadd.s32 4294967295, %v880_v18 }
 0x9d2   :  { %1076 = vset.pattern.permute.xlu1 %v1183_v3  ;;  %vm883_vm13 = vcmp.eq.s32.totalorder %v876_v16, %v1004_v19  ;;  %vm882_vm14 = vcmp.eq.s32.totalorder %v1273_v6, %v1004_v19 }
 0x9d3   :  { %1007 = vmatprep.mubr.msk.f32.mxu0 %vm883_vm13, %v1186_v21 }
 0xa42   :  { %v719_v30 = vpop.permute.xlu0 %718 }
 0xa43   :  { %v721_v31 = vsub.f32 %v1323_v47, %v719_v30 }
 0xa45   :  { %731 = vperm.xlu1 %1076, %v721_v31  }
 0xa49   :  { %1087 = vset.pattern.permute.xlu1 %v1184_v8 }
 0xa4d   :  { %v725_v32 = vpop.permute.xlu1 %724 }
 0xa4e   :  { %v727_v33 = vmul.f32 %v725_v32, %v696_v20  ;;  %v728_v34 = vmul.f32 %v725_v32, %v698_v14 }
 0xac4   :  { %v732_v35 = vpop.permute.xlu1 %731 }
 0xac5   :  { %v734_v36 = vadd.f32 %v732_v35, %v727_v33  ;;  %v735_v37 = vadd.f32 %v732_v35, %v728_v34 }
 0xac7   :  { %v736_v38 = vmax.f32 %v734_v36, 0.0  ;;  %v737_v0 = vmax.f32 %v735_v37, 0.0 }
 0xac9   :  { %v1082_v39 = vpack.i.bf16 %v737_v0, %v736_v38 }
 0xacb   :  { %1083 = vrot.lane.b32.xlu1 %v1082_v39, %s1173_s26  ;;  %1078 = vrot.lane.b32.xlu0 %v1082_v39, %s1181_s3 }
 0xb3d   :  { %v1084_v40 = vpop.permute.xlu1 %1083  ;;  %v1079_v41 = vpop.permute.xlu0 %1078 }
 0xb3e   :  { %v1086_v42 = vunpack.i.h.bf16 %v1084_v40  ;;  %v1085_v43 = vunpack.i.l.bf16 %v1084_v40  ;;  %v1081_v44 = vunpack.i.h.bf16 %v1079_v41  ;;  %v1080_v45 = vunpack.i.l.bf16 %v1079_v41 }
 0xb40   :  { %v755_v46 = vsel %vm64_vm3, %v1085_v43, %v1086_v42  ;;  %v758_v48 = vsel %vm64_vm3, 0.0, %v1085_v43  ;;  %v745_v49 = vsel %vm99_vm7, %v1080_v45, %v1081_v44  ;;  %v748_v50 = vsel %vm99_vm7, 0.0, %v1080_v45 }
 0xb41   :  { %v1021_v51 = vpack.c.bf16 %v755_v46, %v745_v49  ;;  %v1024_v52 = vpack.c.bf16 %v758_v48, %v748_v50 }
 0xb43   :  { %1023 = vmatprep.subr.msk.bf16.mxu1 %vm1373_vm12, %v1021_v51 }
 0xb44   :  { %1026 = vmatpush1.bf16.msk.msra.mxu1 %vm1373_vm12, %v1024_v52 }
 0xb45   :  { %768 = vmatprep.subr.mxu1 %v737_v0 }
 0xb48   :  { %769 = vmatpush1.msra.mxu1 %v736_v38 }
 0xb49   :  { %1003 = vmatmul.mubr.msk.f32.vlgmr.msra.gmra.mrb[6].mxu1 %vm401_vm9, %v738_v53 }
 0xc1c   :  { %v830_v56 = vpop.f32.mrb[6].mxu1 }
 0xc1d   :  { %v832_v57 = vpop.f32.mrb[7].mxu1 }
 0xc1e   :  { %v835_v58 = vadd.f32 %v832_v57, %v830_v56 }
 0xc20   :  { %836 = vadd.xlane.f32.xlu0 %v835_v58 }
 0xcad   :  { %v837_v59 = vpop.xlane.xlu0 %836 }
 0xcae   :  { %v838_v60 = vmul.f32 0.00390625, %v837_v59 }
 0xcb0   :  { %v839_v61 = vsub.f32 %v830_v56, %v838_v60  ;;  %v840_v62 = vsub.f32 %v832_v57, %v838_v60 }
 0xcb2   :  { %v841_v63 = vmul.f32 %v839_v61, %v839_v61  ;;  %v842_v4 = vmul.f32 %v840_v62, %v840_v62 }
 0xcb4   :  { %v843_v5 = vadd.f32 %v842_v4, %v841_v63 }
 0xcb6   :  { %844 = vadd.xlane.f32.xlu1 %v843_v5 }
 0xd43   :  { %v845_v10 = vpop.xlane.xlu1 %844 }
 0xd44   :  { %v846_v11 = vmul.f32 0.00390625, %v845_v10 }
 0xd46   :  { %v847_v1 = vadd.f32 1e-05, %v846_v11 }
 0xd48   :  { %1095 = vrsqrt.f32 %v847_v1 }
 0xd52   :  { %v1096_v12 = vpop.eup %1095 }
 0xd53   :  { %v849_v13 = vmul.f32 %v1096_v12, %v1323_v47 }
 0xd55   :  { %858 = vperm.xlu1 %1087, %v849_v13   ;;  %v850_v20 = vmul.f32 %v849_v13, %v838_v60 }
 0xd57   :  { %852 = vrot.lane.b32.xlu0 %v850_v20, %s1174_s5 }
 0xdc9   :  { %v853_v14 = vpop.permute.xlu0 %852 }
 0xdca   :  { %v855_v15 = vsub.f32 %v1323_v47, %v853_v14 }
 0xdcc   :  { %865 = vperm.xlu0 %1088, %v855_v15  }
 0xdd4   :  { %v859_v22 = vpop.permute.xlu1 %858 }
 0xdd5   :  { %v861_v23 = vmul.f32 %v859_v22, %v830_v56  ;;  %v862_v24 = vmul.f32 %v859_v22, %v832_v57 }
 0xe4b   :  { %v866_v25 = vpop.permute.xlu0 %865 }
 0xe4c   :  { %v868_v26 = vadd.f32 %v866_v25, %v861_v23  ;;  %v869_v27 = vadd.f32 %v866_v25, %v862_v24 }
 0xe4e   :  { %v870_v28 = vmax.f32 %v868_v26, 0.0  ;;  %v871_v29 = vmax.f32 %v869_v27, 0.0 }
 0xe50   :  { %v872_v47 = vadd.f32 %v870_v28, %v1356_v54  ;;  %v873_v2 = vadd.f32 %v871_v29, %v1358_v55 }
 0xe52   :  { %v874_v7 = vmax.f32 %v872_v47, 0.0  ;;  %v875_v3 = vmax.f32 %v873_v2, 0.0 }
 0xe54   :  { %888 = vmatprep.subr.mxu0 %v875_v3 }
 0xe55   :  { %889 = vmatpush1.xpose.msra.mxu0 %v874_v7 }
 0xe58   :  { %1008 = vmatmul.mubr.msk.f32.vlgmr.msra.gmra.mrb[4].mxu0 %vm882_vm14, %v1186_v21 }
 0xf2b   :  { %v954_v30 = vpop.f32.mrb[4].mxu0 }
 0xf2c   :  { %v956_v31 = vpop.f32.mrb[5].mxu0  ;;  %959 = vst.msk [vmem:[#allocation7] sm:$0x3] %vm958_vm15, %v954_v30 }
 0xf2d   :  { %1152 = shalt.err (!%p1149_p6)
}
 0xf2e   :  { %s1153_s17 = scalar_lea.hbm %s1428_s7, 32 }
 0xf2f   :  { %p1154_p7 = scmp.ne.s32.totalorder %s1428_s7, %s1153_s17  ;;  %p1157_p8 = scmp.lt.u32.totalorder %s1153_s17, %s1428_s7 }
 0xf31   :  { %p1159_p9 = pnand %p1157_p8, %p1154_p7 }
 0xf33   :  { %1162 = shalt.err (!%p1159_p9)
}
 0xf34   :  { %969 = dma.vmem_to_hbm [thread:$0]  %s967_s13, 32, %s1428_s7, [#allocation4]  }
 0xf35   :  { %1167 = dma.done.wait [#allocation4], 32  }
 0xf36   :  { %1168 = vsyncadd [#allocation4], 4294967264 }
 0xf37   :  { %973 = vsyncpa [#allocation3], 1 }
 0xf38   :  { %974 = vsyncpa [#allocation6], 1 }
 0xf39   :  { %975 = vsyncpa [#allocation4], 1 }

</bundles_post_ra>
